<compile_context>
chip_gen: v6e
topology: v6e:2x2x1
jax: 0.10.0
libtpu: 0.0.40
codegen_flags: <defaults>
</compile_context>

<pallas_src>
import functools

import jax
import jax.numpy as jnp
from jax import lax
from jax.experimental import pallas as pl
from jax.experimental.pallas import tpu as pltpu

_FALLBACK_LANES = 1024                       # lane width for the padded fallback
_LANE_CANDIDATES = (8192, 4096, 2048, 1024, 512, 256, 128)


def _device_plan():
    """Per-generation output-block byte budget and minimum grid size."""
    kind = ""
    try:
        kind = jax.devices()[0].device_kind.lower()
    except Exception:
        pass
    is_v5e = ("v5 lite" in kind) or ("v5e" in kind) or ("v5lite" in kind)
    is_v7 = ("v7" in kind) or ("tpu7" in kind) or ("7x" in kind)
    block_bytes = (4 if is_v5e else 8) * 1024 * 1024   # 4 MiB v5e, 8 MiB v6e/v7x
    min_grid = 2 if is_v7 else 1                        # keep both v7x TCs busy
    return block_bytes, min_grid


def _mantissa_bits(dtype):
    d = jnp.dtype(dtype)
    if d == jnp.dtype(jnp.bfloat16):
        return 7
    if d == jnp.dtype(jnp.float16):
        return 10
    return 23


def _hash_bits(shape, seed_u32, base_i32):
    """Portable counter-based PRNG (murmur3 fmix32) for non-TPU backends."""
    r, c = shape
    rows = lax.broadcasted_iota(jnp.int32, shape, 0)
    cols = lax.broadcasted_iota(jnp.int32, shape, 1)
    idx = (base_i32 + rows * c + cols).astype(jnp.uint32)
    x = idx + seed_u32 * jnp.uint32(0x9E3779B9)
    x = x ^ (x >> jnp.uint32(16))
    x = x * jnp.uint32(0x85EBCA6B)
    x = x ^ (x >> jnp.uint32(13))
    x = x * jnp.uint32(0xC2B2AE35)
    x = x ^ (x >> jnp.uint32(16))
    return x


def _rand_uniform_kernel(seed_ref, o_ref, *, on_tpu, mant_bits):
    # seed_ref: scalar-prefetch SMEM (1,) int32 ; o_ref: VMEM (block_rows, lanes)
    # TODO(synk): F.dropout(x2, p=0.5) output is discarded by the reference
    # model, so x2 is never read and no dropout math is emitted here.
    i = pl.program_id(0)
    shape = o_ref.shape
    if on_tpu:
        pltpu.prng_seed(seed_ref[0], i)              # distinct stream per block
        raw = pltpu.prng_random_bits(shape)
        bits = raw if raw.dtype == jnp.uint32 else pltpu.bitcast(raw, jnp.uint32)
    else:
        base = i * (shape[0] * shape[1])
        bits = _hash_bits(shape, seed_ref[0].astype(jnp.uint32), base)

    # Mantissa trick, keeping only `mant_bits` of entropy so the value is
    # exactly representable in o_ref.dtype and stays strictly below 1.0.
    keep = (bits >> jnp.uint32(32 - mant_bits)) << jnp.uint32(23 - mant_bits)
    fbits = keep | jnp.uint32(0x3F800000)            # float32 in [1, 2)
    if on_tpu:
        f = pltpu.bitcast(fbits, jnp.float32)
    else:
        f = lax.bitcast_convert_type(fbits, jnp.float32)
    o_ref[...] = (f - jnp.float32(1.0)).astype(o_ref.dtype)


def _pick_block_rows(rows, lanes, itemsize, block_bytes, min_grid):
    """Rows per output block: a multiple of 8 (or == rows when rows < 8),
    sized to ~block_bytes, capped so the grid has >= min_grid steps when
    the row count allows it.  The grid need not divide rows evenly."""
    if rows < 8:
        return rows                                  # single full-extent block
    target = max(8, (block_bytes // (lanes * itemsize)) // 8 * 8)
    if min_grid > 1 and rows >= 16:
        per_core = -(-rows // min_grid)              # ceil(rows / min_grid)
        per_core = max(8, ((per_core + 7) // 8) * 8)
        target = min(target, per_core)
    return min(target, (rows // 8) * 8)


def model_forward(x2, seed=0):
    """Equivalent of Model.forward(x2): uniform [0, 1) tensor like x2."""
    x2 = jnp.asarray(x2)
    n = int(x2.size)
    dtype = x2.dtype
    if n == 0:
        return jnp.zeros(x2.shape, dtype)

    on_tpu = jax.default_backend() == "tpu"
    block_bytes, min_grid = _device_plan()
    itemsize = jnp.dtype(dtype).itemsize
    mant = _mantissa_bits(dtype)
    seed_arr = jnp.asarray([seed], dtype=jnp.int32)

    if n % 128 == 0:
        # Direct path: output is a contiguous 2-D collapse of x2, so the
        # trailing reshape is metadata-only (single HBM write pass, no slice,
        # no astype — the kernel already stores x2.dtype).
        lanes = next(c for c in _LANE_CANDIDATES if n % c == 0)
        rows = n // lanes
        padded = False
    else:
        # Fallback: lane-dense padded slab, sliced down afterwards.
        lanes = _FALLBACK_LANES
        rows = max(8, -(-n // lanes))
        rows = ((rows + 7) // 8) * 8
        padded = True

    block_rows = _pick_block_rows(rows, lanes, itemsize, block_bytes, min_grid)
    grid = (pl.cdiv(rows, block_rows),)

    kwargs = {}
    if on_tpu:
        kwargs["compiler_params"] = pltpu.CompilerParams(
            dimension_semantics=("parallel",),
            vmem_limit_bytes=32 * 1024 * 1024,
        )

    out = pl.pallas_call(
        functools.partial(_rand_uniform_kernel, on_tpu=on_tpu, mant_bits=mant),
        out_shape=jax.ShapeDtypeStruct((rows, lanes), dtype),
        grid_spec=pltpu.PrefetchScalarGridSpec(
            num_scalar_prefetch=1,
            grid=grid,
            in_specs=[],
            out_specs=pl.BlockSpec((block_rows, lanes), lambda i, s_ref: (i, 0)),
        ),
        **kwargs,
    )(seed_arr)

    if padded:
        out = out.reshape(-1)[:n]
    return out.reshape(x2.shape)


if __name__ == "__main__":
    key = jax.random.PRNGKey(0)

    # Shape implied by the module: x2 = torch.randn(1, 2, 2)  (padded path).
    x2 = jax.random.normal(key, (1, 2, 2), dtype=jnp.float32)
    x4 = jax.block_until_ready(model_forward(x2, seed=0))
    assert x4.shape == x2.shape and x4.dtype == x2.dtype
    assert bool(jnp.all(jnp.isfinite(x4)))
    assert bool(jnp.all((x4 >= 0.0) & (x4 < 1.0)))

    # Direct (no-pad, metadata-only reshape) path with a multi-block grid.
    x_big = jnp.zeros((4, 256, 1024), dtype=jnp.float32)
    r_big = jax.block_until_ready(model_forward(x_big, seed=123))
    assert r_big.shape == x_big.shape and r_big.dtype == x_big.dtype
    assert bool(jnp.all((r_big >= 0.0) & (r_big < 1.0)))
    flat = r_big.reshape(-1)
    assert not bool(jnp.all(flat[: flat.size // 2] == flat[flat.size // 2:]))

    # Narrow-dtype path: stored directly as bf16, values strictly below 1.0.
    x_bf16 = jnp.zeros((2, 4, 16, 16), dtype=jnp.bfloat16)
    r_bf16 = jax.block_until_ready(model_forward(x_bf16, seed=7))
    assert r_bf16.shape == x_bf16.shape and r_bf16.dtype == jnp.bfloat16
    r_f32 = r_bf16.astype(jnp.float32)
    assert bool(jnp.all((r_f32 >= 0.0) & (r_f32 < 1.0)))

    print("KERNEL_OK")
</pallas_src>

<mosaic_0001>
module attributes {stable_mosaic.version = 11 : i64} {
  func.func @_rand_uniform_kernel(%arg0: i32, %arg1: memref<1xi32, #tpu.memory_space<smem>>, %arg2: memref<8x1024xf32, #tpu.memory_space<vmem>>) attributes {dimension_semantics = [#tpu.dimension_semantics<arbitrary>], iteration_bounds = array<i64: 1>, scalar_prefetch = 1 : i64, scratch_operands = 0 : i64, tpu.core_type = #tpu.core_type<tc>, window_params = [{transform_indices = @transform_0, window_bounds = array<i64: 8, 1024>}]} {
    %c8192_i32 = arith.constant 8192 : i32
    %0 = arith.muli %arg0, %c8192_i32 : i32
    %c0 = arith.constant 0 : index
    %1 = memref.load %arg1[%c0] : memref<1xi32, #tpu.memory_space<smem>>
    %2 = tpu.iota {dimensions = array<i32: 0>} : vector<8x1024xi32>
    %3 = tpu.iota {dimensions = array<i32: 1>} : vector<8x1024xi32>
    %c1024_i32 = arith.constant 1024 : i32
    %4 = vector.broadcast %c1024_i32 : i32 to vector<8x1024xi32>
    %5 = arith.muli %2, %4 : vector<8x1024xi32>
    %6 = vector.broadcast %0 : i32 to vector<8x1024xi32>
    %7 = arith.addi %6, %5 : vector<8x1024xi32>
    %8 = arith.addi %7, %3 : vector<8x1024xi32>
    %c-1640531527_i32 = arith.constant -1640531527 : i32
    %9 = arith.muli %1, %c-1640531527_i32 : i32
    %10 = vector.broadcast %9 : i32 to vector<8x1024xi32>
    %11 = arith.addi %8, %10 : vector<8x1024xi32>
    %c16_i32 = arith.constant 16 : i32
    %12 = vector.broadcast %c16_i32 : i32 to vector<8x1024xi32>
    %13 = arith.shrui %11, %12 : vector<8x1024xi32>
    %14 = arith.xori %11, %13 : vector<8x1024xi32>
    %c-2048144789_i32 = arith.constant -2048144789 : i32
    %15 = vector.broadcast %c-2048144789_i32 : i32 to vector<8x1024xi32>
    %16 = arith.muli %14, %15 : vector<8x1024xi32>
    %c13_i32 = arith.constant 13 : i32
    %17 = vector.broadcast %c13_i32 : i32 to vector<8x1024xi32>
    %18 = arith.shrui %16, %17 : vector<8x1024xi32>
    %19 = arith.xori %16, %18 : vector<8x1024xi32>
    %c-1028477387_i32 = arith.constant -1028477387 : i32
    %20 = vector.broadcast %c-1028477387_i32 : i32 to vector<8x1024xi32>
    %21 = arith.muli %19, %20 : vector<8x1024xi32>
    %c16_i32_0 = arith.constant 16 : i32
    %22 = vector.broadcast %c16_i32_0 : i32 to vector<8x1024xi32>
    %23 = arith.shrui %21, %22 : vector<8x1024xi32>
    %24 = arith.xori %21, %23 : vector<8x1024xi32>
    %c9_i32 = arith.constant 9 : i32
    %25 = vector.broadcast %c9_i32 : i32 to vector<8x1024xi32>
    %26 = arith.shrui %24, %25 : vector<8x1024xi32>
    %c0_i32 = arith.constant 0 : i32
    %27 = vector.broadcast %c0_i32 : i32 to vector<8x1024xi32>
    %28 = arith.shli %26, %27 : vector<8x1024xi32>
    %c1065353216_i32 = arith.constant 1065353216 : i32
    %29 = vector.broadcast %c1065353216_i32 : i32 to vector<8x1024xi32>
    %30 = arith.ori %28, %29 : vector<8x1024xi32>
    %31 = tpu.bitcast %30 : vector<8x1024xi32> -> vector<8x1024xf32>
    %cst = arith.constant 1.000000e+00 : f32
    %32 = vector.broadcast %cst : f32 to vector<8x1024xf32>
    %33 = arith.subf %31, %32 : vector<8x1024xf32>
    %c0_1 = arith.constant 0 : index
    %c0_2 = arith.constant 0 : index
    %34 = vector.load %arg2[%c0_1, %c0_2] : memref<8x1024xf32, #tpu.memory_space<vmem>>, vector<8x1024xf32>
    tpu.vector_store %arg2[%c0_1, %c0_2], %33 {strides = array<i32>} : memref<8x1024xf32, #tpu.memory_space<vmem>>, vector<8x1024xf32>,
    return
  }
  func.func @transform_0(%arg0: i32, %arg1: memref<1xi32, #tpu.memory_space<smem>>) -> (i32, i32) {
    %c0_i32 = arith.constant 0 : i32
    %c0_i32_0 = arith.constant 0 : i32
    return %arg0, %c0_i32 : i32, i32
  }
}

</mosaic_0001>

<bundles_post_ra>
// kernel: tpu_custom_call.1
= control target key start
LH: loop header
LB: loop body
LE: loop exit
PB: predicated region body
PF: predicated region fallthrough
CT: control target
= control target key end

     0   :  { %v10_v0 = vlaneseq  ;;  %s208_s0 = inlined_call_operand.<no memory space> [shape: s32[1], index: 0, kind: input, shape index: {}]   ;;  %s209_s1 = inlined_call_operand.hbm [shape: f32[8,1024], index: 1, kind: output, shape index: {}]  }
   0x1   :  { %s32_s8 = smul.u32 2654435769, %s208_s0 }
   0x2   :  { %7 = vsyncpa [#allocation5], 0  ;;  %v11_v1 = vshrl.u32 %v10_v0, 7  ;;  %v13_v2 = vand.u32 127, %v10_v0  ;;  %s191_s0 = smov [#allocation4]  }
   0x3   :  { %v33_v3 = vstv %s32_s8  ;;  %s152_s9 = sshll.u32 %s191_s0, 4  ;;  %s153_s9 = int_to_ptr.vmem [resolvable:$true] %s152_s9 }
   0x4   :  { %v21_v4 = vmul.u32 1024, %v11_v1  ;;  %v14_v5 = vadd.s32 128, %v13_v2  ;;  %v15_v6 = vadd.s32 256, %v13_v2  ;;  %v16_v7 = vadd.s32 384, %v13_v2  ;;  %s169_s10 = scalar_lea.vmem %s153_s9, 1024  ;;  %p174_p1 = scmp.lt.s32.totalorder %s153_s9, %s153_s9 }
   0x5   :  { %v17_v8 = vadd.s32 512, %v13_v2  ;;  %v18_v9 = vadd.s32 640, %v13_v2  ;;  %v19_v10 = vadd.s32 768, %v13_v2  ;;  %v20_v11 = vadd.s32 896, %v13_v2  ;;  %p170_p0 = scmp.ne.s32.totalorder %s153_s9, %s169_s10  ;;  %p175_p2 = scmp.lt.s32.totalorder %s169_s10, %s169_s10 }
   0x6   :  { %v24_v12 = vadd.s32 %v21_v4, %v13_v2  ;;  %v25_v13 = vadd.s32 %v21_v4, %v14_v5  ;;  %v26_v14 = vadd.s32 %v21_v4, %v15_v6  ;;  %v27_v15 = vadd.s32 %v21_v4, %v16_v7 }
   0x7   :  { %v28_v16 = vadd.s32 %v21_v4, %v17_v8  ;;  %v29_v17 = vadd.s32 %v21_v4, %v18_v9  ;;  %v30_v18 = vadd.s32 %v21_v4, %v19_v10  ;;  %v31_v19 = vadd.s32 %v21_v4, %v20_v11  ;;  %p176_p3 = por %p175_p2, %p174_p1 }
   0x8   :  { %v34_v20 = vadd.s32 %v33_v3, %v24_v12  ;;  %v35_v21 = vadd.s32 %v33_v3, %v25_v13  ;;  %v36_v22 = vadd.s32 %v33_v3, %v26_v14  ;;  %v37_v23 = vadd.s32 %v33_v3, %v27_v15 }
   0x9   :  { %v38_v24 = vadd.s32 %v33_v3, %v28_v16  ;;  %v39_v25 = vadd.s32 %v33_v3, %v29_v17  ;;  %v40_v26 = vadd.s32 %v33_v3, %v30_v18  ;;  %v41_v27 = vadd.s32 %v33_v3, %v31_v19  ;;  %p177_p4 = pnand %p176_p3, %p170_p0 }
   0xa   :  { %v42_v28 = vshrl.u32 %v34_v20, 16  ;;  %v43_v29 = vshrl.u32 %v35_v21, 16  ;;  %v44_v30 = vshrl.u32 %v36_v22, 16  ;;  %v45_v31 = vshrl.u32 %v37_v23, 16 }
   0xb   :  { %v46_v32 = vshrl.u32 %v38_v24, 16  ;;  %v47_v33 = vshrl.u32 %v39_v25, 16  ;;  %v48_v34 = vshrl.u32 %v40_v26, 16  ;;  %v49_v35 = vshrl.u32 %v41_v27, 16 }
   0xc   :  { %v50_v36 = vxor.u32 %v42_v28, %v34_v20  ;;  %v51_v37 = vxor.u32 %v43_v29, %v35_v21  ;;  %v52_v38 = vxor.u32 %v44_v30, %v36_v22  ;;  %v53_v39 = vxor.u32 %v45_v31, %v37_v23 }
   0xd   :  { %v54_v40 = vxor.u32 %v46_v32, %v38_v24  ;;  %v55_v41 = vxor.u32 %v47_v33, %v39_v25  ;;  %v56_v42 = vxor.u32 %v48_v34, %v40_v26  ;;  %v57_v43 = vxor.u32 %v49_v35, %v41_v27 }
   0xe   :  { %v58_v44 = vmul.u32 2246822507, %v50_v36  ;;  %v59_v45 = vmul.u32 2246822507, %v51_v37 }
   0xf   :  { %v60_v46 = vmul.u32 2246822507, %v52_v38  ;;  %v61_v47 = vmul.u32 2246822507, %v53_v39 }
  0x10   :  { %v66_v48 = vshrl.u32 %v58_v44, 13  ;;  %v67_v49 = vshrl.u32 %v59_v45, 13  ;;  %v62_v50 = vmul.u32 2246822507, %v54_v40  ;;  %v63_v51 = vmul.u32 2246822507, %v55_v41 }
  0x11   :  { %v68_v52 = vshrl.u32 %v60_v46, 13  ;;  %v69_v53 = vshrl.u32 %v61_v47, 13  ;;  %v64_v54 = vmul.u32 2246822507, %v56_v42  ;;  %v65_v55 = vmul.u32 2246822507, %v57_v43 }
  0x12   :  { %v74_v56 = vxor.u32 %v66_v48, %v58_v44  ;;  %v75_v57 = vxor.u32 %v67_v49, %v59_v45  ;;  %v70_v58 = vshrl.u32 %v62_v50, 13  ;;  %v71_v59 = vshrl.u32 %v63_v51, 13 }
  0x13   :  { %v76_v60 = vxor.u32 %v68_v52, %v60_v46  ;;  %v77_v61 = vxor.u32 %v69_v53, %v61_v47  ;;  %v72_v62 = vshrl.u32 %v64_v54, 13  ;;  %v73_v63 = vshrl.u32 %v65_v55, 13 }
  0x14   :  { %v82_v0 = vmul.u32 3266489909, %v74_v56  ;;  %v83_v1 = vmul.u32 3266489909, %v75_v57  ;;  %v78_v2 = vxor.u32 %v70_v58, %v62_v50  ;;  %v79_v3 = vxor.u32 %v71_v59, %v63_v51 }
  0x15   :  { %v84_v4 = vmul.u32 3266489909, %v76_v60  ;;  %v85_v5 = vmul.u32 3266489909, %v77_v61  ;;  %v80_v6 = vxor.u32 %v72_v62, %v64_v54  ;;  %v81_v7 = vxor.u32 %v73_v63, %v65_v55 }
  0x16   :  { %v90_v8 = vshrl.u32 %v82_v0, 16  ;;  %v91_v9 = vshrl.u32 %v83_v1, 16  ;;  %v86_v10 = vmul.u32 3266489909, %v78_v2  ;;  %v87_v11 = vmul.u32 3266489909, %v79_v3 }
  0x17   :  { %v92_v12 = vshrl.u32 %v84_v4, 16  ;;  %v93_v13 = vshrl.u32 %v85_v5, 16  ;;  %v88_v14 = vmul.u32 3266489909, %v80_v6  ;;  %v89_v15 = vmul.u32 3266489909, %v81_v7 }
  0x18   :  { %v98_v16 = vxor.u32 %v90_v8, %v82_v0  ;;  %v99_v17 = vxor.u32 %v91_v9, %v83_v1  ;;  %v94_v18 = vshrl.u32 %v86_v10, 16  ;;  %v95_v19 = vshrl.u32 %v87_v11, 16 }
  0x19   :  { %v100_v20 = vxor.u32 %v92_v12, %v84_v4  ;;  %v101_v21 = vxor.u32 %v93_v13, %v85_v5  ;;  %v96_v22 = vshrl.u32 %v88_v14, 16  ;;  %v97_v23 = vshrl.u32 %v89_v15, 16 }
  0x1a   :  { %v106_v24 = vshrl.u32 %v98_v16, 9  ;;  %v107_v25 = vshrl.u32 %v99_v17, 9  ;;  %v102_v26 = vxor.u32 %v94_v18, %v86_v10  ;;  %v103_v27 = vxor.u32 %v95_v19, %v87_v11 }
  0x1b   :  { %v108_v28 = vshrl.u32 %v100_v20, 9  ;;  %v109_v29 = vshrl.u32 %v101_v21, 9  ;;  %v104_v30 = vxor.u32 %v96_v22, %v88_v14  ;;  %v105_v31 = vxor.u32 %v97_v23, %v89_v15 }
  0x1c   :  { %v114_v32 = vor.u32 1065353216, %v106_v24  ;;  %v115_v33 = vor.u32 1065353216, %v107_v25  ;;  %v110_v34 = vshrl.u32 %v102_v26, 9  ;;  %v111_v35 = vshrl.u32 %v103_v27, 9 }
  0x1d   :  { %v116_v36 = vor.u32 1065353216, %v108_v28  ;;  %v117_v37 = vor.u32 1065353216, %v109_v29  ;;  %v112_v38 = vshrl.u32 %v104_v30, 9  ;;  %v113_v39 = vshrl.u32 %v105_v31, 9 }
  0x1e   :  { %v160_v40 = vadd.f32 -1.0, %v114_v32  ;;  %v161_v41 = vadd.f32 -1.0, %v115_v33  ;;  %v118_v42 = vor.u32 1065353216, %v110_v34  ;;  %v119_v43 = vor.u32 1065353216, %v111_v35 }
  0x1f   :  { %v162_v44 = vadd.f32 -1.0, %v116_v36  ;;  %v163_v45 = vadd.f32 -1.0, %v117_v37  ;;  %v120_v46 = vor.u32 1065353216, %v112_v38  ;;  %v121_v47 = vor.u32 1065353216, %v113_v39 }
  0x20   :  { %138 = vst [vmem:[#allocation4] sm:$0xff] %v160_v40  ;;  %139 = vst [vmem:[#allocation4 + $0x8] sm:$0xff] %v161_v41  ;;  %v164_v48 = vadd.f32 -1.0, %v118_v42  ;;  %v165_v49 = vadd.f32 -1.0, %v119_v43 }
  0x21   :  { %140 = vst [vmem:[#allocation4 + $0x10] sm:$0xff] %v162_v44  ;;  %141 = vst [vmem:[#allocation4 + $0x18] sm:$0xff] %v163_v45  ;;  %v166_v50 = vadd.f32 -1.0, %v120_v46  ;;  %v167_v51 = vadd.f32 -1.0, %v121_v47 }
  0x22   :  { %142 = vst [vmem:[#allocation4 + $0x20] sm:$0xff] %v164_v48  ;;  %143 = vst [vmem:[#allocation4 + $0x28] sm:$0xff] %v165_v49 }
  0x23   :  { %144 = vst [vmem:[#allocation4 + $0x30] sm:$0xff] %v166_v50  ;;  %145 = vst [vmem:[#allocation4 + $0x38] sm:$0xff] %v167_v51 }
  0x24   :  { %180 = shalt.err (!%p177_p4)
}
  0x25   :  { %155 = dma.vmem_to_hbm [thread:$0]  %s153_s9, 1024, %s209_s1, [#allocation5]  }
  0x26   :  { %189 = dma.done.wait [#allocation5], 1024  }
  0x27   :  { %190 = vsyncadd [#allocation5], 4294966272 }
  0x28   :  { %159 = vsyncpa [#allocation5], 1 }

</bundles_post_ra>
